<compile_context>
chip_gen: v7x
topology: tpu7x:2x2x1
jax: 0.10.0
libtpu: 0.0.40
codegen_flags: <defaults>
</compile_context>

<pallas_src>
import functools

import jax
import jax.numpy as jnp
from jax.experimental import pallas as pl
from jax.experimental.pallas import tpu as pltpu


def _round_up(x, m):
    return ((x + m - 1) // m) * m


# ---------------------------------------------------------------------------
# Pallas kernels
# ---------------------------------------------------------------------------
def _mm_kernel(a_ref, b_ref, bias_ref, *rest, relu, has_res):
    """K/N-tiled bf16 matmul, f32 accumulator scratch, fused f32 epilogue:
       out = maybe_relu(acc + bias [+ residual])."""
    if has_res:
        res_ref, o_ref, acc_ref = rest
    else:
        o_ref, acc_ref = rest

    @pl.when(pl.program_id(2) == 0)
    def _():
        acc_ref[...] = jnp.zeros_like(acc_ref)

    acc_ref[...] += jnp.dot(a_ref[...], b_ref[...],
                            preferred_element_type=jnp.float32)

    @pl.when(pl.program_id(2) == pl.num_programs(2) - 1)
    def _():
        out = acc_ref[...] + bias_ref[...]
        if has_res:
            out = out + res_ref[...].astype(jnp.float32)
        if relu:
            out = jnp.maximum(out, 0.0)
        o_ref[...] = out.astype(o_ref.dtype)


def matmul_bias(a, b, bias, *, relu=False, residual=None, out_dtype=jnp.bfloat16):
    """out = maybe_relu(a @ b + bias [+ residual]); a:(M,K) b:(K,N) bias:(1,N)/(N,)."""
    M, K = a.shape
    K2, N = b.shape
    assert K == K2

    TM = min(_round_up(M, 8), 256)
    Mp = _round_up(M, TM)

    if K % 128 == 0:
        TK = 512 if K % 512 == 0 else (256 if K % 256 == 0 else 128)
    else:
        TK = K                       # small K (e.g. 64) as a single full-dim block
    if N % 256 == 0:
        TN = 256
    elif N % 128 == 0:
        TN = 128
    else:
        TN = N                       # e.g. N=64 layers: full-dim block

    a = a.astype(jnp.bfloat16)
    b = b.astype(jnp.bfloat16)
    if Mp != M:
        a = jnp.pad(a, ((0, Mp - M), (0, 0)))
    bias2d = bias.reshape(1, N).astype(jnp.float32)

    has_res = residual is not None
    inputs = [a, b, bias2d]
    in_specs = [
        pl.BlockSpec((TM, TK), lambda i, j, k: (i, k)),
        pl.BlockSpec((TK, TN), lambda i, j, k: (k, j)),
        pl.BlockSpec((1, TN), lambda i, j, k: (0, j)),
    ]
    if has_res:
        r = residual.astype(jnp.bfloat16)
        if Mp != M:
            r = jnp.pad(r, ((0, Mp - M), (0, 0)))
        inputs.append(r)
        in_specs.append(pl.BlockSpec((TM, TN), lambda i, j, k: (i, j)))

    out = pl.pallas_call(
        functools.partial(_mm_kernel, relu=relu, has_res=has_res),
        out_shape=jax.ShapeDtypeStruct((Mp, N), out_dtype),
        grid=(Mp // TM, N // TN, K // TK),
        in_specs=in_specs,
        out_specs=pl.BlockSpec((TM, TN), lambda i, j, k: (i, j)),
        scratch_shapes=[pltpu.VMEM((TM, TN), jnp.float32)],
        compiler_params=pltpu.CompilerParams(
            dimension_semantics=("parallel", "parallel", "arbitrary")),
    )(*inputs)
    if Mp != M:
        out = out[:M]
    return out


def _max9_kernel(*refs):
    # elementwise max over the 9 shifted pooling views (one image per grid step)
    o_ref = refs[-1]
    m = refs[0][...]
    for r in refs[1:-1]:
        m = jnp.maximum(m, r[...])
    o_ref[...] = m


def _mean_relu_kernel(x_ref, o_ref):
    # global average pool over the spatial axis, fused with the module's outer ReLU
    x = x_ref[...].astype(jnp.float32)
    o_ref[...] = jnp.maximum(jnp.mean(x, axis=1), 0.0)


def _head_kernel(feat_ref, spd_ref,
                 wsp1_ref, bsp1_ref, wsp2_ref, bsp2_ref,
                 wei_ref, wes_ref, be_ref,
                 wb1_ref, bb1_ref, wb2_ref, bb2_ref, wb3_ref, bb3_ref,
                 wq1_ref, bq1_ref, wq2_ref, bq2_ref, wq3_ref, bq3_ref,
                 ctrl_ref, spd_out_ref):
    """Entire FC head in one kernel: speed encoder, emb_fc, 4 control branches
    (layer-1 weights stacked along N, layers 2/3 looped in-kernel) and speed branch.
    All matmuls use bf16 operands with f32 accumulation; activations stay in VMEM."""
    f32 = jnp.float32
    bf16 = jnp.bfloat16

    def dense(x, w, b, relu):
        y = jnp.dot(x, w, preferred_element_type=f32) + b
        if relu:
            y = jnp.maximum(y, 0.0)
        return y

    feat = feat_ref[...]                       # (Bp, 512) bf16
    spd = spd_ref[...]                         # (Bp, 128) bf16 (col 0 = speed)

    # speed encoder: Linear(1,128)-ReLU, Linear(128,128)-ReLU  (Dropout -> identity)
    s = dense(spd, wsp1_ref[...], bsp1_ref[...], True).astype(bf16)
    s = dense(s, wsp2_ref[...], bsp2_ref[...], True).astype(bf16)

    # emb_fc on concat(feat, speed): split into two matmuls, fused bias + ReLU
    emb = (jnp.dot(feat, wei_ref[...], preferred_element_type=f32)
           + jnp.dot(s, wes_ref[...], preferred_element_type=f32)
           + be_ref[...])
    emb = jnp.maximum(emb, 0.0).astype(bf16)   # (Bp, 512)

    # 4 control branches; layer-1 weights stacked -> one (512, 1024) matmul
    h1 = dense(emb, wb1_ref[...], bb1_ref[...], True)          # (Bp, 1024) f32
    for c in range(4):
        hc = h1[:, c * 256:(c + 1) * 256].astype(bf16)
        hc = dense(hc, wb2_ref[c], bb2_ref[c], True).astype(bf16)
        ctrl_ref[c] = dense(hc, wb3_ref[c], bb3_ref[c], False).astype(ctrl_ref.dtype)

    # speed prediction branch (runs on the pooled image features)
    q = dense(feat, wq1_ref[...], bq1_ref[...], True).astype(bf16)
    q = dense(q, wq2_ref[...], bq2_ref[...], True).astype(bf16)
    spd_out_ref[...] = dense(q, wq3_ref[...], bq3_ref[...], False).astype(
        spd_out_ref.dtype)


# ---------------------------------------------------------------------------
# Conv / pool wrappers (im2col glue in plain JAX, compute in Pallas)
# ---------------------------------------------------------------------------
def conv_bn(x, cp, *, relu, residual=None):
    """x: (B,H,W,Cin) bf16 NHWC.  cp holds the pre-folded bf16 weight matrix
    (BN scale folded in, K pre-padded) and the f32 bias (BN shift)."""
    B, H, W, Cin = x.shape
    kh, kw, stride, pad = cp["kh"], cp["kw"], cp["stride"], cp["pad"]
    Kp, Cout = cp["w"].shape
    Ho = (H + 2 * pad - kh) // stride + 1
    Wo = (W + 2 * pad - kw) // stride + 1

    xp = jnp.pad(x, ((0, 0), (pad, pad), (pad, pad), (0, 0))) if pad > 0 else x

    if kh == 1 and kw == 1:
        if stride > 1:
            xp = xp[:, ::stride, ::stride, :]
        A = xp.reshape(B * Ho * Wo, Cin)
    else:
        cols = [xp[:, i:i + stride * Ho:stride, j:j + stride * Wo:stride, :]
                for i in range(kh) for j in range(kw)]
        K_im = kh * kw * Cin
        if Kp > K_im:   # fold the K padding into the im2col concat (no extra copy)
            cols.append(jnp.zeros((B, Ho, Wo, Kp - K_im), x.dtype))
        A = jnp.concatenate(cols, axis=-1).reshape(B * Ho * Wo, Kp)

    res2d = None
    if residual is not None:
        res2d = residual.reshape(B * Ho * Wo, Cout)

    out = matmul_bias(A, cp["w"], cp["b"], relu=relu, residual=res2d,
                      out_dtype=jnp.bfloat16)
    return out.reshape(B, Ho, Wo, Cout)


def maxpool_3x3_s2(x):
    """3x3 max pool, stride 2, pad 1 (torchvision ResNet stem); gridded over batch,
    the 9 shifted views are separate inputs (no (9,M,C) stack in one VMEM block)."""
    B, H, W, C = x.shape
    k, s, pad = 3, 2, 1
    Ho = (H + 2 * pad - k) // s + 1
    Wo = (W + 2 * pad - k) // s + 1
    xp = jnp.pad(x, ((0, 0), (pad, pad), (pad, pad), (0, 0)),
                 constant_values=-jnp.inf)
    views = [xp[:, i:i + s * Ho:s, j:j + s * Wo:s, :]
             for i in range(k) for j in range(k)]
    spec = pl.BlockSpec((1, Ho, Wo, C), lambda b: (b, 0, 0, 0))
    return pl.pallas_call(
        _max9_kernel,
        out_shape=jax.ShapeDtypeStruct((B, Ho, Wo, C), x.dtype),
        grid=(B,),
        in_specs=[spec] * 9,
        out_specs=spec,
        compiler_params=pltpu.CompilerParams(dimension_semantics=("parallel",)),
    )(*views)


def basic_block(x, blk):
    """torchvision BasicBlock with the residual add+ReLU fused into conv2's epilogue."""
    identity = x
    out = conv_bn(x, blk["conv1"], relu=True)
    if "down" in blk:
        identity = conv_bn(x, blk["down"], relu=False)
    return conv_bn(out, blk["conv2"], relu=True, residual=identity)


# ---------------------------------------------------------------------------
# Deterministic synthetic parameters + kernel-ready preprocessing
# ---------------------------------------------------------------------------
def _winit(key, shape, scale=0.05):
    return scale * jax.random.normal(key, shape, jnp.float32)


def _bn_affine(key, c):
    k1, k2 = jax.random.split(key)
    gamma = 1.0 + 0.1 * jax.random.normal(k1, (c,), jnp.float32)
    beta = 0.1 * jax.random.normal(k2, (c,), jnp.float32)
    running_mean = jnp.zeros((c,), jnp.float32)
    running_var = jnp.ones((c,), jnp.float32)
    eps = 1e-5
    scale = gamma / jnp.sqrt(running_var + eps)
    shift = beta - running_mean * scale
    return scale, shift


def _linear_params(key, fin, fout):
    k1, k2 = jax.random.split(key)
    return _winit(k1, (fin, fout)), _winit(k2, (fout,))


def init_params(key):
    keys = iter(jax.random.split(key, 256))
    nk = lambda: next(keys)
    p = {}
    p["conv1_w"] = _winit(nk(), (7, 7, 3, 64))
    p["bn1"] = _bn_affine(nk(), 64)

    def make_block(cin, cout, stride):
        blk = {
            "conv1_w": _winit(nk(), (3, 3, cin, cout)),
            "bn1": _bn_affine(nk(), cout),
            "conv2_w": _winit(nk(), (3, 3, cout, cout)),
            "bn2": _bn_affine(nk(), cout),
            "stride": stride,
        }
        if stride != 1 or cin != cout:
            blk["down_w"] = _winit(nk(), (1, 1, cin, cout))
            blk["down_bn"] = _bn_affine(nk(), cout)
        return blk

    stages = []
    for (cin, cout, stride) in [(64, 64, 1), (64, 128, 2), (128, 256, 2), (256, 512, 2)]:
        stages.append([make_block(cin, cout, stride), make_block(cout, cout, 1)])
    p["layers"] = stages

    p["speed_fc"] = [_linear_params(nk(), 1, 128), _linear_params(nk(), 128, 128)]
    p["emb_fc"] = _linear_params(nk(), 512 + 128, 512)
    p["branches"] = []
    for _ in range(4):
        w1, b1 = _linear_params(nk(), 512, 256)
        w2, b2 = _linear_params(nk(), 256, 256)
        w3, b3 = _linear_params(nk(), 256, 3)
        p["branches"].append((w1, b1, w2, b2, w3, b3))
    w1, b1 = _linear_params(nk(), 512, 256)
    w2, b2 = _linear_params(nk(), 256, 256)
    w3, b3 = _linear_params(nk(), 256, 1)
    p["speed_branch"] = (w1, b1, w2, b2, w3, b3)
    return p


def _fold_conv(w, scale, shift, *, kh, kw, stride, pad):
    """Fold BN scale into the conv weight columns, reshape to a matmul weight,
    pad K once, cast to bf16.  BN shift becomes the bias of the fused epilogue."""
    cout = w.shape[-1]
    wmat = (w * scale).reshape(kh * kw * w.shape[2], cout)
    if kh * kw > 1:
        Kp = _round_up(wmat.shape[0], 128)
        if Kp > wmat.shape[0]:
            wmat = jnp.pad(wmat, ((0, Kp - wmat.shape[0]), (0, 0)))
    return {"w": wmat.astype(jnp.bfloat16),
            "b": shift.reshape(1, cout).astype(jnp.float32),
            "kh": kh, "kw": kw, "stride": stride, "pad": pad}


def prepare_params(raw):
    bf = jnp.bfloat16
    f32 = jnp.float32
    p = {"stem": _fold_conv(raw["conv1_w"], *raw["bn1"], kh=7, kw=7, stride=2, pad=3)}

    layers = []
    for stage in raw["layers"]:
        blks = []
        for blk in stage:
            d = {"conv1": _fold_conv(blk["conv1_w"], *blk["bn1"],
                                     kh=3, kw=3, stride=blk["stride"], pad=1),
                 "conv2": _fold_conv(blk["conv2_w"], *blk["bn2"],
                                     kh=3, kw=3, stride=1, pad=1)}
            if "down_w" in blk:
                d["down"] = _fold_conv(blk["down_w"], *blk["down_bn"],
                                       kh=1, kw=1, stride=blk["stride"], pad=0)
            blks.append(d)
        layers.append(blks)
    p["layers"] = layers

    # -- fused head parameters (padded + cast once) --
    (w_sp1, b_sp1), (w_sp2, b_sp2) = raw["speed_fc"]
    wsp1 = jnp.pad(w_sp1, ((0, 127), (0, 0))).astype(bf)         # (1,128)->(128,128)
    bsp1 = b_sp1.reshape(1, 128).astype(f32)
    wsp2 = w_sp2.astype(bf)
    bsp2 = b_sp2.reshape(1, 128).astype(f32)

    w_emb, b_emb = raw["emb_fc"]                                 # (640,512),(512,)
    wei = w_emb[:512].astype(bf)
    wes = w_emb[512:].astype(bf)
    be = b_emb.reshape(1, 512).astype(f32)

    brs = raw["branches"]
    wb1 = jnp.concatenate([br[0] for br in brs], axis=1).astype(bf)       # (512,1024)
    bb1 = jnp.concatenate([br[1] for br in brs]).reshape(1, 1024).astype(f32)
    wb2 = jnp.stack([br[2] for br in brs]).astype(bf)                     # (4,256,256)
    bb2 = jnp.stack([br[3] for br in brs]).reshape(4, 1, 256).astype(f32)
    wb3 = jnp.stack([jnp.pad(br[4], ((0, 0), (0, 125))) for br in brs]).astype(bf)
    bb3 = jnp.stack([jnp.pad(br[5], (0, 125)) for br in brs]).reshape(4, 1, 128).astype(f32)

    sb = raw["speed_branch"]
    wq1 = sb[0].astype(bf)
    bq1 = sb[1].reshape(1, 256).astype(f32)
    wq2 = sb[2].astype(bf)
    bq2 = sb[3].reshape(1, 256).astype(f32)
    wq3 = jnp.pad(sb[4], ((0, 0), (0, 127))).astype(bf)                   # (256,1)->(256,128)
    bq3 = jnp.pad(sb[5], (0, 127)).reshape(1, 128).astype(f32)

    p["head"] = [wsp1, bsp1, wsp2, bsp2, wei, wes, be,
                 wb1, bb1, wb2, bb2, wb3, bb3,
                 wq1, bq1, wq2, bq2, wq3, bq3]
    return p


# ---------------------------------------------------------------------------
# Full forward pass (matches CILRS.forward semantics)
# ---------------------------------------------------------------------------
def cilrs_forward(params, img_nchw, command, speed):
    B = img_nchw.shape[0]
    x = jnp.transpose(img_nchw, (0, 2, 3, 1)).astype(jnp.bfloat16)   # NCHW -> NHWC

    # ResNet-18 backbone (fc removed)
    x = conv_bn(x, params["stem"], relu=True)
    x = maxpool_3x3_s2(x)
    for stage in params["layers"]:
        for blk in stage:
            x = basic_block(x, blk)

    # adaptive avg-pool to 1x1, squeeze, and the module's extra ReLU (fused)
    Bx, H, W, C = x.shape
    feat = pl.pallas_call(
        _mean_relu_kernel,
        out_shape=jax.ShapeDtypeStruct((Bx, C), jnp.float32),
    )(x.reshape(Bx, H * W, C))                                       # (B, 512)

    # fused FC head (speed encoder + emb_fc + 4 control branches + speed branch)
    Bp = _round_up(B, 8)
    feat_p = jnp.zeros((Bp, C), jnp.bfloat16).at[:B].set(feat.astype(jnp.bfloat16))
    spd_p = jnp.zeros((Bp, 128), jnp.bfloat16).at[:B, 0].set(speed.astype(jnp.bfloat16))

    ctrl, spd_out = pl.pallas_call(
        _head_kernel,
        out_shape=(jax.ShapeDtypeStruct((4, Bp, 128), jnp.float32),
                   jax.ShapeDtypeStruct((Bp, 128), jnp.float32)),
    )(feat_p, spd_p, *params["head"])

    # conditional branch selection by per-sample command
    sel = ctrl[command, jnp.arange(B)]                               # (B, 128)
    pred_control = sel[:, :3]                                        # (B, 3)
    pred_speed = spd_out[:B, :1]                                     # (B, 1)
    return pred_control, pred_speed


if __name__ == "__main__":
    key = jax.random.PRNGKey(0)
    pkey, ikey, skey = jax.random.split(key, 3)

    raw_params = init_params(pkey)
    params = prepare_params(raw_params)

    B = 2
    img = jax.random.normal(ikey, (B, 3, 32, 32), jnp.float32)       # NCHW, like PyTorch
    command = jnp.array([1, 3], dtype=jnp.int32)                     # values in {0,1,2,3}
    speed = 10.0 * jax.random.uniform(skey, (B,), jnp.float32)

    pred_control, pred_speed = cilrs_forward(params, img, command, speed)
    (pred_control, pred_speed) = jax.block_until_ready((pred_control, pred_speed))

    assert pred_control.shape == (B, 3), pred_control.shape
    assert pred_speed.shape == (B, 1), pred_speed.shape
    assert jnp.all(jnp.isfinite(pred_control)) and jnp.all(jnp.isfinite(pred_speed))
    print("KERNEL_OK")
</pallas_src>

<mosaic_0001>
module attributes {stable_mosaic.version = 11 : i64} {
  func.func @_mm_kernel(%arg0: i32, %arg1: i32, %arg2: i32, %arg3: memref<256x256xbf16, #tpu.memory_space<vmem>>, %arg4: memref<256x64xbf16, #tpu.memory_space<vmem>>, %arg5: memref<1x64xf32, #tpu.memory_space<vmem>>, %arg6: memref<256x64xbf16, #tpu.memory_space<vmem>>, %arg7: memref<256x64xf32, #tpu.memory_space<vmem>>) attributes {dimension_semantics = [#tpu.dimension_semantics<parallel>, #tpu.dimension_semantics<parallel>, #tpu.dimension_semantics<arbitrary>], iteration_bounds = array<i64: 2, 1, 1>, scalar_prefetch = 0 : i64, scratch_operands = 1 : i64, tpu.core_type = #tpu.core_type<tc>, window_params = [{transform_indices = @transform_0, window_bounds = array<i64: 256, 256>}, {transform_indices = @transform_1, window_bounds = array<i64: 256, 64>}, {transform_indices = @transform_2, window_bounds = array<i64: 1, 64>}, {transform_indices = @transform_3, window_bounds = array<i64: 256, 64>}]} {
    %c0_i32 = arith.constant 0 : i32
    %0 = arith.cmpi eq, %arg2, %c0_i32 : i32
    %1 = arith.extui %0 : i1 to i32
    %c0_i32_0 = arith.constant 0 : i32
    %2 = arith.cmpi ne, %1, %c0_i32_0 : i32
    scf.if %2 {
      %cst_10 = arith.constant 0.000000e+00 : f32
      %12 = vector.broadcast %cst_10 : f32 to vector<256x64xf32>
      %c0_11 = arith.constant 0 : index
      %c0_12 = arith.constant 0 : index
      %13 = vector.load %arg7[%c0_11, %c0_12] : memref<256x64xf32, #tpu.memory_space<vmem>>, vector<256x64xf32>
      tpu.vector_store %arg7[%c0_11, %c0_12], %12 {strides = array<i32>} : memref<256x64xf32, #tpu.memory_space<vmem>>, vector<256x64xf32>,
    } else {
    }
    %c0 = arith.constant 0 : index
    %c0_1 = arith.constant 0 : index
    %3 = vector.load %arg7[%c0, %c0_1] : memref<256x64xf32, #tpu.memory_space<vmem>>, vector<256x64xf32>
    %c0_2 = arith.constant 0 : index
    %c0_3 = arith.constant 0 : index
    %4 = vector.load %arg3[%c0_2, %c0_3] : memref<256x256xbf16, #tpu.memory_space<vmem>>, vector<256x256xbf16>
    %c0_4 = arith.constant 0 : index
    %c0_5 = arith.constant 0 : index
    %5 = vector.load %arg4[%c0_4, %c0_5] : memref<256x64xbf16, #tpu.memory_space<vmem>>, vector<256x64xbf16>
    %cst = arith.constant dense<0.000000e+00> : vector<256x64xf32>
    %6 = tpu.matmul %4, %5, %cst {dimension_numbers = #tpu.dot_dimension_numbers<[1], [0], [0], [1], [0, 0, 1, 1], [], []>} : vector<256x256xbf16>, vector<256x64xbf16>, vector<256x64xf32> -> vector<256x64xf32>
    %7 = arith.addf %3, %6 : vector<256x64xf32>
    %c0_6 = arith.constant 0 : index
    %c0_7 = arith.constant 0 : index
    %8 = vector.load %arg7[%c0_6, %c0_7] : memref<256x64xf32, #tpu.memory_space<vmem>>, vector<256x64xf32>
    tpu.vector_store %arg7[%c0_6, %c0_7], %7 {strides = array<i32>} : memref<256x64xf32, #tpu.memory_space<vmem>>, vector<256x64xf32>,
    %c0_i32_8 = arith.constant 0 : i32
    %9 = arith.cmpi eq, %arg2, %c0_i32_8 : i32
    %10 = arith.extui %9 : i1 to i32
    %c0_i32_9 = arith.constant 0 : i32
    %11 = arith.cmpi ne, %10, %c0_i32_9 : i32
    scf.if %11 {
      %c0_10 = arith.constant 0 : index
      %c0_11 = arith.constant 0 : index
      %12 = vector.load %arg7[%c0_10, %c0_11] : memref<256x64xf32, #tpu.memory_space<vmem>>, vector<256x64xf32>
      %c0_12 = arith.constant 0 : index
      %c0_13 = arith.constant 0 : index
      %13 = vector.load %arg5[%c0_12, %c0_13] : memref<1x64xf32, #tpu.memory_space<vmem>>, vector<1x64xf32>
      %14 = vector.broadcast %13 : vector<1x64xf32> to vector<256x64xf32>
      %15 = arith.addf %12, %14 : vector<256x64xf32>
      %cst_14 = arith.constant 0.000000e+00 : f32
      %16 = vector.broadcast %cst_14 : f32 to vector<256x64xf32>
      %17 = arith.maximumf %15, %16 : vector<256x64xf32>
      %18 = arith.truncf %17 : vector<256x64xf32> to vector<256x64xbf16>
      %c0_15 = arith.constant 0 : index
      %c0_16 = arith.constant 0 : index
      %19 = vector.load %arg6[%c0_15, %c0_16] : memref<256x64xbf16, #tpu.memory_space<vmem>>, vector<256x64xbf16>
      tpu.vector_store %arg6[%c0_15, %c0_16], %18 {strides = array<i32>} : memref<256x64xbf16, #tpu.memory_space<vmem>>, vector<256x64xbf16>,
    } else {
    }
    return
  }
  func.func @transform_0(%arg0: i32, %arg1: i32, %arg2: i32) -> (i32, i32) {
    %c0_i32 = arith.constant 0 : i32
    return %arg0, %arg2 : i32, i32
  }
  func.func @transform_1(%arg0: i32, %arg1: i32, %arg2: i32) -> (i32, i32) {
    %c0_i32 = arith.constant 0 : i32
    return %arg2, %arg1 : i32, i32
  }
  func.func @transform_2(%arg0: i32, %arg1: i32, %arg2: i32) -> (i32, i32) {
    %c0_i32 = arith.constant 0 : i32
    %c0_i32_0 = arith.constant 0 : i32
    return %c0_i32, %arg1 : i32, i32
  }
  func.func @transform_3(%arg0: i32, %arg1: i32, %arg2: i32) -> (i32, i32) {
    %c0_i32 = arith.constant 0 : i32
    return %arg0, %arg1 : i32, i32
  }
}

</mosaic_0001>

<bundles_post_ra>
// kernel: tpu_custom_call.1
= control target key start
LH: loop header
LB: loop body
LE: loop exit
PB: predicated region body
PF: predicated region fallthrough
CT: control target
= control target key end

     0   :  { %8 = vsyncpa [#allocation4], 0  ;;  %s2140_s0 = inlined_call_operand.hbm [shape: bf16[512,256], index: 0, kind: input, shape index: {}]   ;;  %s2141_s1 = inlined_call_operand.vmem [shape: bf16[256,64], index: 1, kind: input, shape index: {}]   ;;  %s2142_s2 = inlined_call_operand.vmem [shape: f32[1,64], index: 2, kind: input, shape index: {}]   ;;  %s2143_s3 = inlined_call_operand.vmem [shape: bf16[512,64], index: 3, kind: output, shape index: {}]  }
   0x1   :  { %10 = vsyncpa [#allocation4 + $0x1], 0  ;;  %s1765_s12 = smov 0   ;;  %s1767_s13 = smov 0  }
   0x2   :  { %s1769_s14 = smov 0   ;;  %s1771_s15 = smov 0  }
   0x3   :  { %s1773_s16 = smov 0   ;;  %s1775_s17 = smov 0  }
   0x4 LB: > { %s1278_s18 = sadd.s32 4294967295, %s1739_s17   ;;  %s35_s19 = sadd.s32 1, %s1735_s16  ;;  %s1739_s17 = sphi %s1775_s17, %s16_s17   ;;  %s1735_s16 = sphi %s1773_s16, %s2151_s16   ;;  %s1731_s15 = sphi %s1771_s15, %s2150_s15   ;;  %s1727_s14 = sphi %s1769_s14, %s2149_s14   ;;  %s1723_s13 = sphi %s1767_s13, %s2148_s13   ;;  %s1719_s12 = sphi %s1765_s12, %s2147_s12  }
   0x5   : > { %p37_p0 = scmp.ge.s32.totalorder %s35_s19, 2  ;;  %s44_s20 = sadd.s32 1, %s1727_s14 }
   0x6   : > { %p51_p1 = scmp.ne.s32.totalorder %s1727_s14, %s1723_s13  ;;  %p52_p2 = scmp.eq.s32.totalorder %s1739_s17, 0 }
   0x7   : > { %s2153_s19 = smov (%p37_p0, %s35_s19), 0  ;;  %p57_p4 = scmp.ne.s32.totalorder %s1723_s13, %s1719_s12 }
   0x8   : > { %p1801_p3 = por %p52_p2, %p51_p1  ;;  %s39_s22 = ssub.s32 %s1735_s16, %s2153_s19 }
   0x9   : > { %p58_p5 = scmp.eq.s32.totalorder %s1278_s18, 0  ;;  %p42_p6 = scmp.eq.s32.totalorder %s39_s22, 0 }
   0xa   : > { %p1543_p8 = scmp.lt.s32.totalorder %s1739_s17, 2  ;;  %s181_s25 = sand.u32 1, %s1727_s14  }
   0xb   : > { %p1808_p7 = por %p58_p5, %p57_p4  ;;  %s1376_s26 = sshll.u32 %s1735_s16, 12 }
   0xc   : > { %s1814_s24 = scalar_select %p42_p6, %s1727_s14, %s44_s20  }
   0xd   : > { %s1284_s27 = sshll.u32 %s181_s25, 8  ;;  %s1821_s30 = scalar_lea.hbm %s2140_s0, %s1376_s26 }
   0xe   : > { %s185_s4 = scalar_lea.vmem [#allocation3], %s1284_s27  ;;  %p1825_p9 = pnand %p1543_p8, %p1801_p3 }
   0xf   : > { %s195_s5 = sshll.u32 %s185_s4, 4  ;;  %s1831_s7 = scalar_lea.sflag [#allocation4], %s181_s25  ;;  %s1829_s5 = int_to_ptr.vmem [resolvable:$true] %s195_s5 }
  0x10   : > { %s1659_s8 = scalar_lea.hbm %s1821_s30, 4096  ;;  %p1661_p11 = pneg %p1825_p9 }
  0x11   : > { %p1660_p10 = scmp.ne.s32.totalorder %s1821_s30, %s1659_s8  ;;  %s1664_s11 = scalar_lea.hbm %s2140_s0, 8192 }
  0x12   : > { %p1665_p0 = scmp.lt.u32.totalorder %s1821_s30, %s2140_s0  ;;  %p1666_p1 = scmp.lt.u32.totalorder %s1664_s11, %s1659_s8 }
  0x13   : > { %p1662_p12 = pnand %p1661_p11, %p1660_p10  ;;  %p1668_p3 = scmp.lt.u32.totalorder %s1659_s8, %s1821_s30 }
  0x14   : > { %p1667_p2 = por %p1666_p1, %p1665_p0 }
  0x15   : > { %p1663_p13 = pneg %p1662_p12 }
  0x16   : > { %p1669_p4 = por %p1668_p3, %p1667_p2 }
  0x18   : > { %p1670_p5 = pnand %p1669_p4, %p1663_p13 }
  0x1a   : > { %1673 = shalt.err (!%p1670_p5)
}
  0x1b   : > { %s1674_s20 = scalar_lea.vmem %s1829_s5, 4096  ;;  %s1741_s21 = smov [#allocation3]  }
  0x1c   : > { %p1675_p6 = scmp.ne.s32.totalorder %s1829_s5, %s1674_s20  ;;  %s1679_s22 = sshll.u32 %s1741_s21, 4  ;;  %s1680_s22 = int_to_ptr.vmem [resolvable:$false] %s1679_s22 }
  0x1d   : > { %s1681_s25 = scalar_lea.vmem %s1680_s22, 8192  ;;  %p1682_p12 = scmp.lt.s32.totalorder %s1829_s5, %s1680_s22 }
  0x1e   : > { %p1677_p8 = pnand %p1675_p6, %p1661_p11  ;;  %p1683_p0 = scmp.lt.s32.totalorder %s1681_s25, %s1674_s20 }
  0x20   : > { %p1678_p10 = pneg %p1677_p8  ;;  %p1684_p1 = por %p1683_p0, %p1682_p12 }
  0x22   : > { %p1685_p2 = pnand %p1684_p1, %p1678_p10 }
  0x24   : > { %1688 = shalt.err (!%p1685_p2)
}
  0x25   : > { %s1742_s26 = smov 128   ;;  %s1743_s27 = smov 8  }
  0x26   : > { %1542 = dma.hbm_to_vmem [thread:$0]  (!%p1825_p9), %s1821_s30, 4096, %s1829_s5, %s1831_s7, %s1742_s26, %s1742_s26, %s1743_s27  }
  0x27   : > { %p1288_p11 = scmp.ge.s32.totalorder %s1739_s17, 1  ;;  %p203_p13 = scmp.lt.s32.totalorder %s1739_s17, 3 }
  0x29   : > { %p204_p3 = pnand %p1288_p11, %p203_p13 }
  0x2a   : > { %s209_s28 = sand.u32 (!%p204_p3), 1, %s1723_s13  }
  0x2b   : > { %207 = sbr.rel (%p204_p3) target bundleno = 377 (0x179), region = 32  ;;  %s1289_s29 = sshll.u32 (!%p204_p3), %s209_s28, 8 }
  0x2c   : > { %s210_s4 = scalar_lea.sflag (!%p204_p3), [#allocation4], %s209_s28  ;;  %s1862_s8 = scalar_lea.vmem (!%p204_p3), [#allocation3], %s1289_s29 }
  0x32   : > { %1714 = dma.done.wait (%p1808_p7), %s210_s4, 4096  }
  0x33   : > { %1716 = vsyncadd (%p1808_p7), %s210_s4, 4294963200  ;;  %v1595_v0 = vld [vmem:[%s2141_s1 + $0x40] sm:$0xff]   ;;  %v1597_v2 = vld [vmem:[%s2141_s1 + $0x48] sm:$0xff]   ;;  %vm278_vm0 = vcmask 523264   ;;  %v1744_v48 = vmov 0.0   ;;  %vm1123_vm1 = vcmask 519168  }
  0x34   : > { %v1596_v1 = vld [vmem:[%s2141_s1] sm:$0xff]   ;;  %1409 = vmatprep.subr.bf16.mxu0 %v1595_v0  ;;  %1521 = vmatprep.subr.bf16.mxu1 %v1595_v0  ;;  %v1598_v3 = vld [vmem:[%s2141_s1 + $0x8] sm:$0xff]   ;;  %v1599_v4 = vld [vmem:[%s2141_s1 + $0x50] sm:$0xff]   ;;  %279 = vst.msk [vmem:[#allocation2] sm:$0xff] %vm278_vm0, %v1744_v48 }
  0x35   : > { %1410 = vmatpush3.bf16.msra.mxu0 %v1596_v1  ;;  %1529 = vmatpush3.bf16.msra.mxu1 %v1596_v1  ;;  %v1600_v5 = vld [vmem:[%s2141_s1 + $0x10] sm:$0xff]   ;;  %v1601_v6 = vld [vmem:[%s2141_s1 + $0x58] sm:$0xff]   ;;  %v1603_v8 = vld [vmem:[%s2141_s1 + $0x60] sm:$0xff]   ;;  %280 = vst.msk [vmem:[#allocation2 + $0x8] sm:$0xff] %vm278_vm0, %v1744_v48 }
  0x36   : > { %1411 = vmatprep.subr.bf16.mxu0 %v1597_v2  ;;  %1522 = vmatprep.subr.bf16.mxu1 %v1597_v2  ;;  %v1602_v7 = vld [vmem:[%s2141_s1 + $0x18] sm:$0xff]   ;;  %v1604_v9 = vld [vmem:[%s2141_s1 + $0x20] sm:$0xff]   ;;  %v1605_v10 = vld [vmem:[%s2141_s1 + $0x68] sm:$0xff]   ;;  %281 = vst.msk [vmem:[#allocation2 + $0x10] sm:$0xff] %vm278_vm0, %v1744_v48 }
  0x37   : > { %v1613_v11 = vld [vmem:[%s1862_s8 + $0x4] ss:$8 sps:$4 sm:$0xff]   ;;  %v1607_v14 = vld [vmem:[%s2141_s1 + $0x70] sm:$0xff]   ;;  %v1609_v16 = vld [vmem:[%s2141_s1 + $0x78] sm:$0xff]   ;;  %282 = vst.msk [vmem:[#allocation2 + $0x18] sm:$0xff] %vm278_vm0, %v1744_v48 }
  0x38   : > { %v1616_v12 = vld [vmem:[%s1862_s8 + $0x84] ss:$8 sps:$4 sm:$0xff]   ;;  %695 = vmatprep.mubr.bf16.mxu0 %v1613_v11  ;;  %v1608_v15 = vld [vmem:[%s2141_s1 + $0x30] sm:$0xff]   ;;  %v1610_v17 = vld [vmem:[%s2141_s1 + $0x38] sm:$0xff]   ;;  %283 = vst.msk [vmem:[#allocation2 + $0x20] sm:$0xff] %vm278_vm0, %v1744_v48 }
  0x39   : > { %1412 = vmatpush3.bf16.msra.mxu0 %v1598_v3  ;;  %1530 = vmatpush3.bf16.msra.mxu1 %v1598_v3  ;;  %v1606_v13 = vld [vmem:[%s2141_s1 + $0x28] sm:$0xff]   ;;  %v1617_v20 = vld [vmem:[%s1862_s8 + $0x14] ss:$8 sps:$4 sm:$0xff]   ;;  %v1621_v22 = vld [vmem:[%s1862_s8 + $0x10] ss:$8 sps:$4 sm:$0xff]   ;;  %284 = vst.msk [vmem:[#allocation2 + $0x28] sm:$0xff] %vm278_vm0, %v1744_v48 }
  0x3a   : > { %1413 = vmatprep.subr.bf16.mxu0 %v1599_v4  ;;  %1523 = vmatprep.subr.bf16.mxu1 %v1599_v4  ;;  %v1611_v18 = vld [vmem:[%s1862_s8] ss:$8 sps:$4 sm:$0xff]   ;;  %v1619_v21 = vld [vmem:[%s1862_s8 + $0x94] ss:$8 sps:$4 sm:$0xff]   ;;  %v1622_v23 = vld [vmem:[%s1862_s8 + $0x90] ss:$8 sps:$4 sm:$0xff]  }
  0x3b   : > { %759 = vmatprep.mubr.bf16.mxu1 %v1616_v12  ;;  %v1614_v19 = vld [vmem:[%s1862_s8 + $0x80] ss:$8 sps:$4 sm:$0xff]   ;;  %v1623_v24 = vld [vmem:[%s1862_s8 + $0x24] ss:$8 sps:$4 sm:$0xff]   ;;  %v1629_v28 = vld [vmem:[%s1862_s8 + $0x34] ss:$8 sps:$4 sm:$0xff]  }
  0x3c   : > { %v1625_v25 = vld [vmem:[%s1862_s8 + $0xa4] ss:$8 sps:$4 sm:$0xff]   ;;  %v1627_v26 = vld [vmem:[%s1862_s8 + $0x20] ss:$8 sps:$4 sm:$0xff]   ;;  %v1631_v29 = vld [vmem:[%s1862_s8 + $0xb4] ss:$8 sps:$4 sm:$0xff]  }
  0x3d   : > { %1414 = vmatpush3.bf16.msra.mxu0 %v1600_v5  ;;  %1531 = vmatpush3.bf16.msra.mxu1 %v1600_v5  ;;  %v1628_v27 = vld [vmem:[%s1862_s8 + $0xa0] ss:$8 sps:$4 sm:$0xff]   ;;  %v1633_v30 = vld [vmem:[%s1862_s8 + $0x30] ss:$8 sps:$4 sm:$0xff]   ;;  %v1635_v32 = vld [vmem:[%s1862_s8 + $0x44] ss:$8 sps:$4 sm:$0xff]  }
  0x3e   : > { %1415 = vmatprep.subr.bf16.mxu0 %v1601_v6  ;;  %1524 = vmatprep.subr.bf16.mxu1 %v1601_v6  ;;  %v1634_v31 = vld [vmem:[%s1862_s8 + $0xb0] ss:$8 sps:$4 sm:$0xff]   ;;  %v1637_v33 = vld [vmem:[%s1862_s8 + $0xc4] ss:$8 sps:$4 sm:$0xff]   ;;  %v1639_v34 = vld [vmem:[%s1862_s8 + $0x40] ss:$8 sps:$4 sm:$0xff]  }
  0x3f   : > { %v1640_v35 = vld [vmem:[%s1862_s8 + $0xc0] ss:$8 sps:$4 sm:$0xff]   ;;  %v1641_v36 = vld [vmem:[%s1862_s8 + $0x54] ss:$8 sps:$4 sm:$0xff]   ;;  %v1645_v38 = vld [vmem:[%s1862_s8 + $0x50] ss:$8 sps:$4 sm:$0xff]  }
  0x40   : > { %v1643_v37 = vld [vmem:[%s1862_s8 + $0xd4] ss:$8 sps:$4 sm:$0xff]   ;;  %v1646_v39 = vld [vmem:[%s1862_s8 + $0xd0] ss:$8 sps:$4 sm:$0xff]   ;;  %v1647_v40 = vld [vmem:[%s1862_s8 + $0x64] ss:$8 sps:$4 sm:$0xff]  }
  0x41   : > { %1416 = vmatpush3.bf16.msra.mxu0 %v1602_v7  ;;  %1532 = vmatpush3.bf16.msra.mxu1 %v1602_v7  ;;  %v1649_v41 = vld [vmem:[%s1862_s8 + $0xe4] ss:$8 sps:$4 sm:$0xff]   ;;  %v1651_v42 = vld [vmem:[%s1862_s8 + $0x60] ss:$8 sps:$4 sm:$0xff]   ;;  %v1653_v44 = vld [vmem:[%s1862_s8 + $0x74] ss:$8 sps:$4 sm:$0xff]  }
  0x42   : > { %1417 = vmatprep.subr.bf16.mxu0 %v1603_v8  ;;  %1525 = vmatprep.subr.bf16.mxu1 %v1603_v8  ;;  %v1652_v43 = vld [vmem:[%s1862_s8 + $0xe0] ss:$8 sps:$4 sm:$0xff]   ;;  %v1655_v45 = vld [vmem:[%s1862_s8 + $0xf4] ss:$8 sps:$4 sm:$0xff]   ;;  %v1657_v46 = vld [vmem:[%s1862_s8 + $0x70] ss:$8 sps:$4 sm:$0xff]  }
  0x43   : > { %v1658_v47 = vld [vmem:[%s1862_s8 + $0xf0] ss:$8 sps:$4 sm:$0xff]   ;;  %285 = vst.msk [vmem:[#allocation2 + $0x30] sm:$0xff] %vm278_vm0, %v1744_v48  ;;  %286 = vst.msk [vmem:[#allocation2 + $0x38] sm:$0xff] %vm278_vm0, %v1744_v48  ;;  %v311_v51 = vld [vmem:[#allocation2] sm:$0xff]  ;;  %s1290_s8 = sshll.u32 %s1731_s15, 5 }
  0x44   : > { %287 = vst.msk [vmem:[#allocation2 + $0x40] sm:$0xff] %vm278_vm0, %v1744_v48  ;;  %288 = vst.msk [vmem:[#allocation2 + $0x48] sm:$0xff] %vm278_vm0, %v1744_v48  ;;  %v312_v59 = vld [vmem:[#allocation2 + $0x8] sm:$0xff]  ;;  %p265_p7 = scmp.lt.s32.totalorder %s1290_s8, 63  ;;  %v313_v7 = vld [vmem:[#allocation2 + $0x10] sm:$0xff] }
  0x45   : > { %1418 = vmatpush3.bf16.msra.mxu0 %v1604_v9  ;;  %1533 = vmatpush3.bf16.msra.mxu1 %v1604_v9  ;;  %289 = vst.msk [vmem:[#allocation2 + $0x50] sm:$0xff] %vm278_vm0, %v1744_v48  ;;  %290 = vst.msk [vmem:[#allocation2 + $0x58] sm:$0xff] %vm278_vm0, %v1744_v48 }
  0x46   : > { %1419 = vmatprep.subr.bf16.mxu0 %v1605_v10  ;;  %1526 = vmatprep.subr.bf16.mxu1 %v1605_v10  ;;  %291 = vst.msk [vmem:[#allocation2 + $0x60] sm:$0xff] %vm278_vm0, %v1744_v48  ;;  %292 = vst.msk [vmem:[#allocation2 + $0x68] sm:$0xff] %vm278_vm0, %v1744_v48  ;;  %s2155_s8 = smov (!%p265_p7, %s1290_s8), 63 }
  0x47   : > { %293 = vst.msk [vmem:[#allocation2 + $0x70] sm:$0xff] %vm278_vm0, %v1744_v48  ;;  %294 = vst.msk [vmem:[#allocation2 + $0x78] sm:$0xff] %vm278_vm0, %v1744_v48  ;;  %s1291_s26 = sshll.u32 %s2155_s8, 2 }
  0x48   : > { %295 = vst.msk [vmem:[#allocation2 + $0x80] sm:$0xff] %vm278_vm0, %v1744_v48  ;;  %296 = vst.msk [vmem:[#allocation2 + $0x88] sm:$0xff] %vm278_vm0, %v1744_v48  ;;  %s2004_s29 = scalar_lea.vmem %s2143_s3, %s1291_s26 }
  0x49   : > { %1420 = vmatpush3.bf16.msra.mxu0 %v1606_v13  ;;  %1534 = vmatpush3.bf16.msra.mxu1 %v1606_v13  ;;  %297 = vst.msk [vmem:[#allocation2 + $0x90] sm:$0xff] %vm278_vm0, %v1744_v48  ;;  %298 = vst.msk [vmem:[#allocation2 + $0x98] sm:$0xff] %vm278_vm0, %v1744_v48 }
  0x4a   : > { %1421 = vmatprep.subr.bf16.mxu0 %v1607_v14  ;;  %1527 = vmatprep.subr.bf16.mxu1 %v1607_v14  ;;  %299 = vst.msk [vmem:[#allocation2 + $0xa0] sm:$0xff] %vm278_vm0, %v1744_v48  ;;  %300 = vst.msk [vmem:[#allocation2 + $0xa8] sm:$0xff] %vm278_vm0, %v1744_v48 }
  0x4b   : > { %301 = vst.msk [vmem:[#allocation2 + $0xb0] sm:$0xff] %vm278_vm0, %v1744_v48  ;;  %302 = vst.msk [vmem:[#allocation2 + $0xb8] sm:$0xff] %vm278_vm0, %v1744_v48 }
  0x4c   : > { %303 = vst.msk [vmem:[#allocation2 + $0xc0] sm:$0xff] %vm278_vm0, %v1744_v48  ;;  %304 = vst.msk [vmem:[#allocation2 + $0xc8] sm:$0xff] %vm278_vm0, %v1744_v48 }
  0x4d   : > { %1422 = vmatpush3.bf16.msra.mxu0 %v1608_v15  ;;  %1535 = vmatpush3.bf16.msra.mxu1 %v1608_v15  ;;  %305 = vst.msk [vmem:[#allocation2 + $0xd0] sm:$0xff] %vm278_vm0, %v1744_v48  ;;  %306 = vst.msk [vmem:[#allocation2 + $0xd8] sm:$0xff] %vm278_vm0, %v1744_v48  ;;  %v1990_v15 = vld [vmem:[%s2142_s2] ss:$0 sm:$0xff] }
  0x4e   : > { %1423 = vmatprep.subr.bf16.mxu0 %v1609_v16  ;;  %1528 = vmatprep.subr.bf16.mxu1 %v1609_v16  ;;  %307 = vst.msk [vmem:[#allocation2 + $0xe0] sm:$0xff] %vm278_vm0, %v1744_v48  ;;  %308 = vst.msk [vmem:[#allocation2 + $0xe8] sm:$0xff] %vm278_vm0, %v1744_v48  ;;  %v314_v16 = vld [vmem:[#allocation2 + $0x18] sm:$0xff] }
  0x4f   : > { %309 = vst.msk [vmem:[#allocation2 + $0xf0] sm:$0xff] %vm278_vm0, %v1744_v48  ;;  %310 = vst.msk [vmem:[#allocation2 + $0xf8] sm:$0xff] %vm278_vm0, %v1744_v48  ;;  %v327_v53 = vld [vmem:[#allocation2 + $0x80] sm:$0xff]  ;;  %v328_v61 = vld [vmem:[#allocation2 + $0x88] sm:$0xff] }
  0x50   : > { %v329_v9 = vld [vmem:[#allocation2 + $0x90] sm:$0xff] }
  0x51   : > { %1424 = vmatpush3.bf16.msra.mxu0 %v1610_v17  ;;  %1536 = vmatpush3.bf16.msra.mxu1 %v1610_v17 }
  0x54   : > { %696 = vmatmul.mubr.bf16.vlgmr.msra.gmra.mrb[0].mxu0 %v1611_v18  ;;  %760 = vmatmul.mubr.bf16.vlgmr.msra.gmra.mrb[0].mxu1 %v1614_v19  ;;  %v330_v18 = vld [vmem:[#allocation2 + $0x98] sm:$0xff] }
  0x55   : > { %703 = vmatprep.mubr.bf16.mxu0 %v1617_v20  ;;  %767 = vmatprep.mubr.bf16.mxu1 %v1619_v21 }
  0x5c   : > { %704 = vmatmul.mubr.bf16.gmra.mrb[4].mxu0 %v1621_v22  ;;  %768 = vmatmul.mubr.bf16.gmra.mrb[4].mxu1 %v1622_v23 }
  0x5d   : > { %711 = vmatprep.mubr.bf16.mxu0 %v1623_v24  ;;  %775 = vmatprep.mubr.bf16.mxu1 %v1625_v25 }
  0x64   : > { %712 = vmatmul.mubr.bf16.gmra.mrb[8].mxu0 %v1627_v26  ;;  %776 = vmatmul.mubr.bf16.gmra.mrb[8].mxu1 %v1628_v27 }
  0x65   : > { %719 = vmatprep.mubr.bf16.mxu0 %v1629_v28  ;;  %783 = vmatprep.mubr.bf16.mxu1 %v1631_v29 }
  0x6c   : > { %720 = vmatmul.mubr.bf16.gmra.mrb[12].mxu0 %v1633_v30  ;;  %784 = vmatmul.mubr.bf16.gmra.mrb[12].mxu1 %v1634_v31 }
  0x6d   : > { %727 = vmatprep.mubr.bf16.mxu0 %v1635_v32  ;;  %791 = vmatprep.mubr.bf16.mxu1 %v1637_v33 }
  0x74   : > { %728 = vmatmul.mubr.bf16.gmra.mrb[16].mxu0 %v1639_v34  ;;  %792 = vmatmul.mubr.bf16.gmra.mrb[16].mxu1 %v1640_v35 }
  0x75   : > { %735 = vmatprep.mubr.bf16.mxu0 %v1641_v36  ;;  %799 = vmatprep.mubr.bf16.mxu1 %v1643_v37 }
  0x7c   : > { %736 = vmatmul.mubr.bf16.gmra.mrb[20].mxu0 %v1645_v38  ;;  %800 = vmatmul.mubr.bf16.gmra.mrb[20].mxu1 %v1646_v39 }
  0x7d   : > { %743 = vmatprep.mubr.bf16.mxu0 %v1647_v40  ;;  %807 = vmatprep.mubr.bf16.mxu1 %v1649_v41 }
  0x84   : > { %744 = vmatmul.mubr.bf16.gmra.mrb[24].mxu0 %v1651_v42  ;;  %808 = vmatmul.mubr.bf16.gmra.mrb[24].mxu1 %v1652_v43 }
  0x85   : > { %751 = vmatprep.mubr.bf16.mxu0 %v1653_v44  ;;  %815 = vmatprep.mubr.bf16.mxu1 %v1655_v45  ;;  %v315_v44 = vld [vmem:[#allocation2 + $0x20] sm:$0xff] }
  0x86   : > { %v331_v45 = vld [vmem:[#allocation2 + $0xa0] sm:$0xff] }
  0x8c   : > { %752 = vmatmul.mubr.bf16.gmra.mrb[28].mxu0 %v1657_v46  ;;  %816 = vmatmul.mubr.bf16.gmra.mrb[28].mxu1 %v1658_v47 }
 0x127   : > { %v1425_v49 = vpop.f32.mrb[0].mxu0  ;;  %v1473_v50 = vpop.f32.mrb[0].mxu1 }
 0x128   : > { %v1426_v52 = vpop.f32.mrb[1].mxu0  ;;  %v1474_v54 = vpop.f32.mrb[1].mxu1 }
 0x129   : > { %v1427_v55 = vadd.f32 %v1426_v52, %v1425_v49  ;;  %v1475_v56 = vadd.f32 %v1474_v54, %v1473_v50  ;;  %v1428_v57 = vpop.f32.mrb[2].mxu0  ;;  %v1476_v58 = vpop.f32.mrb[2].mxu1  ;;  %v316_v50 = vld [vmem:[#allocation2 + $0x28] sm:$0xff] }
 0x12a   : > { %v1429_v60 = vpop.f32.mrb[3].mxu0  ;;  %v1477_v62 = vpop.f32.mrb[3].mxu1  ;;  %v332_v52 = vld [vmem:[#allocation2 + $0xa8] sm:$0xff] }
 0x12b   : > { %v824_v63 = vadd.f32 %v1427_v55, %v311_v51  ;;  %v840_v0 = vadd.f32 %v1475_v56, %v327_v53  ;;  %v1430_v1 = vadd.f32 %v1429_v60, %v1428_v57  ;;  %v1478_v2 = vadd.f32 %v1477_v62, %v1476_v58 }
 0x12d   : > { %857 = vst.msk [vmem:[#allocation2] sm:$0xff] %vm278_vm0, %v824_v63  ;;  %873 = vst.msk [vmem:[#allocation2 + $0x80] sm:$0xff] %vm278_vm0, %v840_v0  ;;  %v825_v3 = vadd.f32 %v1430_v1, %v312_v59  ;;  %v841_v4 = vadd.f32 %v1478_v2, %v328_v61 }
 0x12f   : > { %858 = vst.msk [vmem:[#allocation2 + $0x8] sm:$0xff] %vm278_vm0, %v825_v3  ;;  %874 = vst.msk [vmem:[#allocation2 + $0x88] sm:$0xff] %vm278_vm0, %v841_v4  ;;  %v1431_v5 = vpop.f32.mrb[4].mxu0  ;;  %v1479_v6 = vpop.f32.mrb[4].mxu1 }
 0x130   : > { %v1432_v8 = vpop.f32.mrb[5].mxu0  ;;  %v1480_v10 = vpop.f32.mrb[5].mxu1 }
 0x131   : > { %v1433_v11 = vadd.f32 %v1432_v8, %v1431_v5  ;;  %v1481_v12 = vadd.f32 %v1480_v10, %v1479_v6  ;;  %v1434_v13 = vpop.f32.mrb[6].mxu0  ;;  %v1482_v14 = vpop.f32.mrb[6].mxu1 }
 0x132   : > { %v1435_v17 = vpop.f32.mrb[7].mxu0  ;;  %v1483_v19 = vpop.f32.mrb[7].mxu1 }
 0x133   : > { %v826_v20 = vadd.f32 %v1433_v11, %v313_v7  ;;  %v842_v21 = vadd.f32 %v1481_v12, %v329_v9  ;;  %v1436_v22 = vadd.f32 %v1435_v17, %v1434_v13  ;;  %v1484_v23 = vadd.f32 %v1483_v19, %v1482_v14  ;;  %v317_v17 = vld [vmem:[#allocation2 + $0x30] sm:$0xff] }
 0x134   : > { %v892_v24 = vld [vmem:[#allocation2] sm:$0xff] }
 0x135   : > { %v908_v25 = vld [vmem:[#allocation2 + $0x80] sm:$0xff]  ;;  %v931_v26 = vadd.f32 %v1990_v15, %v892_v24  ;;  %859 = vst.msk [vmem:[#allocation2 + $0x10] sm:$0xff] %vm278_vm0, %v826_v20  ;;  %875 = vst.msk [vmem:[#allocation2 + $0x90] sm:$0xff] %vm278_vm0, %v842_v21  ;;  %v827_v28 = vadd.f32 %v1436_v22, %v314_v16  ;;  %v843_v29 = vadd.f32 %v1484_v23, %v330_v18  ;;  %v333_v18 = vld [vmem:[#allocation2 + $0xb0] sm:$0xff] }
 0x136   : > { %v947_v27 = vadd.f32 %v1990_v15, %v908_v25  ;;  %v893_v30 = vld [vmem:[#allocation2 + $0x8] sm:$0xff]  ;;  %v318_v23 = vld [vmem:[#allocation2 + $0x38] sm:$0xff] }
 0x137   : > { %v909_v31 = vld [vmem:[#allocation2 + $0x88] sm:$0xff]  ;;  %v963_v32 = vmax.f32 %v931_v26, 0.0  ;;  %v932_v34 = vadd.f32 %v1990_v15, %v893_v30  ;;  %860 = vst.msk [vmem:[#allocation2 + $0x18] sm:$0xff] %vm278_vm0, %v827_v28  ;;  %876 = vst.msk [vmem:[#allocation2 + $0x98] sm:$0xff] %vm278_vm0, %v843_v29  ;;  %v1437_v36 = vpop.f32.mrb[8].mxu0  ;;  %v1485_v37 = vpop.f32.mrb[8].mxu1 }
 0x138   : > { %v979_v33 = vmax.f32 %v947_v27, 0.0  ;;  %v948_v35 = vadd.f32 %v1990_v15, %v909_v31  ;;  %v1438_v38 = vpop.f32.mrb[9].mxu0  ;;  %v1486_v39 = vpop.f32.mrb[9].mxu1  ;;  %v334_v25 = vld [vmem:[#allocation2 + $0xb8] sm:$0xff] }
 0x139   : > { %v1377_v40 = vpack.c.bf16 %v963_v32, %v963_v32  ;;  %v964_v42 = vmax.f32 %v932_v34, 0.0  ;;  %v1440_v46 = vpop.f32.mrb[10].mxu0  ;;  %v1488_v47 = vpop.f32.mrb[10].mxu1  ;;  %v1439_v48 = vadd.f32 %v1438_v38, %v1437_v36  ;;  %v1487_v49 = vadd.f32 %v1486_v39, %v1485_v37 }
 0x13a   : > { %v1393_v41 = vpack.c.bf16 %v979_v33, %v979_v33  ;;  %v980_v43 = vmax.f32 %v948_v35, 0.0  ;;  %v1441_v51 = vpop.f32.mrb[11].mxu0  ;;  %v1489_v53 = vpop.f32.mrb[11].mxu1 }
 0x13b   : > { %1124 = vst.msk [vmem:[%s2004_s29] sm:$0xf] %vm1123_vm1, %v1377_v40  ;;  %v1378_v54 = vpack.c.bf16 %v964_v42, %v964_v42  ;;  %v1442_v56 = vadd.f32 %v1441_v51, %v1440_v46  ;;  %v1490_v57 = vadd.f32 %v1489_v53, %v1488_v47  ;;  %v828_v60 = vadd.f32 %v1439_v48, %v315_v44  ;;  %v319_v47 = vld [vmem:[#allocation2 + $0x40] sm:$0xff] }
 0x13c   : > { %1140 = vst.msk [vmem:[%s2004_s29 + $0x40] sm:$0xf] %vm1123_vm1, %v1393_v41  ;;  %v1394_v55 = vpack.c.bf16 %v980_v43, %v980_v43  ;;  %v894_v58 = vld [vmem:[#allocation2 + $0x10] sm:$0xff]  ;;  %v844_v61 = vadd.f32 %v1487_v49, %v331_v45  ;;  %v335_v49 = vld [vmem:[#allocation2 + $0xc0] sm:$0xff] }
 0x13d   : > { %v910_v59 = vld [vmem:[#allocation2 + $0x90] sm:$0xff]  ;;  %1125 = vst.msk [vmem:[%s2004_s29 + $0x4] sm:$0xf] %vm1123_vm1, %v1378_v54  ;;  %v933_v62 = vadd.f32 %v1990_v15, %v894_v58  ;;  %v829_v0 = vadd.f32 %v1442_v56, %v316_v50  ;;  %v845_v1 = vadd.f32 %v1490_v57, %v332_v52 }
 0x13e   : > { %1141 = vst.msk [vmem:[%s2004_s29 + $0x44] sm:$0xf] %vm1123_vm1, %v1394_v55  ;;  %v949_v63 = vadd.f32 %v1990_v15, %v910_v59  ;;  %v895_v2 = vld [vmem:[#allocation2 + $0x18] sm:$0xff] }
 0x13f   : > { %v911_v3 = vld [vmem:[#allocation2 + $0x98] sm:$0xff]  ;;  %861 = vst.msk [vmem:[#allocation2 + $0x20] sm:$0xff] %vm278_vm0, %v828_v60  ;;  %877 = vst.msk [vmem:[#allocation2 + $0xa0] sm:$0xff] %vm278_vm0, %v844_v61  ;;  %v965_v4 = vmax.f32 %v933_v62, 0.0  ;;  %v934_v6 = vadd.f32 %v1990_v15, %v895_v2  ;;  %v1443_v8 = vpop.f32.mrb[12].mxu0  ;;  %v1491_v9 = vpop.f32.mrb[12].mxu1 }
 0x140   : > { %v981_v5 = vmax.f32 %v949_v63, 0.0  ;;  %v950_v7 = vadd.f32 %v1990_v15, %v911_v3  ;;  %862 = vst.msk [vmem:[#allocation2 + $0x28] sm:$0xff] %vm278_vm0, %v829_v0  ;;  %878 = vst.msk [vmem:[#allocation2 + $0xa8] sm:$0xff] %vm278_vm0, %v845_v1  ;;  %v1444_v10 = vpop.f32.mrb[13].mxu0  ;;  %v1492_v11 = vpop.f32.mrb[13].mxu1  ;;  %v320_v1 = vld [vmem:[#allocation2 + $0x48] sm:$0xff] }
 0x141   : > { %v1379_v12 = vpack.c.bf16 %v965_v4, %v965_v4  ;;  %v966_v14 = vmax.f32 %v934_v6, 0.0  ;;  %v1446_v19 = vpop.f32.mrb[14].mxu0  ;;  %v1494_v20 = vpop.f32.mrb[14].mxu1  ;;  %v1445_v21 = vadd.f32 %v1444_v10, %v1443_v8  ;;  %v1493_v22 = vadd.f32 %v1492_v11, %v1491_v9  ;;  %v336_v2 = vld [vmem:[#allocation2 + $0xc8] sm:$0xff] }
 0x142   : > { %v1395_v13 = vpack.c.bf16 %v981_v5, %v981_v5  ;;  %v982_v16 = vmax.f32 %v950_v7, 0.0  ;;  %v1447_v24 = vpop.f32.mrb[15].mxu0  ;;  %v1495_v26 = vpop.f32.mrb[15].mxu1 }
 0x143   : > { %1126 = vst.msk [vmem:[%s2004_s29 + $0x8] sm:$0xf] %vm1123_vm1, %v1379_v12  ;;  %v1380_v27 = vpack.c.bf16 %v966_v14, %v966_v14  ;;  %v1448_v29 = vadd.f32 %v1447_v24, %v1446_v19  ;;  %v1496_v30 = vadd.f32 %v1495_v26, %v1494_v20  ;;  %v830_v31 = vadd.f32 %v1445_v21, %v317_v17  ;;  %v321_v20 = vld [vmem:[#allocation2 + $0x50] sm:$0xff] }
 0x144   : > { %1142 = vst.msk [vmem:[%s2004_s29 + $0x48] sm:$0xf] %vm1123_vm1, %v1395_v13  ;;  %v1396_v28 = vpack.c.bf16 %v982_v16, %v982_v16  ;;  %v846_v32 = vadd.f32 %v1493_v22, %v333_v18  ;;  %v337_v22 = vld [vmem:[#allocation2 + $0xd0] sm:$0xff] }
 0x145   : > { %1127 = vst.msk [vmem:[%s2004_s29 + $0xc] sm:$0xf] %vm1123_vm1, %v1380_v27  ;;  %v831_v35 = vadd.f32 %v1448_v29, %v318_v23  ;;  %v847_v36 = vadd.f32 %v1496_v30, %v334_v25 }
 0x146   : > { %1143 = vst.msk [vmem:[%s2004_s29 + $0x4c] sm:$0xf] %vm1123_vm1, %v1396_v28  ;;  %v896_v33 = vld [vmem:[#allocation2 + $0x20] sm:$0xff] }
 0x147   : > { %v912_v34 = vld [vmem:[#allocation2 + $0xa0] sm:$0xff]  ;;  %v935_v37 = vadd.f32 %v1990_v15, %v896_v33  ;;  %v897_v39 = vld [vmem:[#allocation2 + $0x28] sm:$0xff]  ;;  %863 = vst.msk [vmem:[#allocation2 + $0x30] sm:$0xff] %vm278_vm0, %v830_v31  ;;  %879 = vst.msk [vmem:[#allocation2 + $0xb0] sm:$0xff] %vm278_vm0, %v846_v32  ;;  %v1449_v43 = vpop.f32.mrb[16].mxu0  ;;  %v1497_v44 = vpop.f32.mrb[16].mxu1 }
 0x148   : > { %v951_v38 = vadd.f32 %v1990_v15, %v912_v34  ;;  %v913_v40 = vld [vmem:[#allocation2 + $0xa8] sm:$0xff]  ;;  %v936_v41 = vadd.f32 %v1990_v15, %v897_v39  ;;  %864 = vst.msk [vmem:[#allocation2 + $0x38] sm:$0xff] %vm278_vm0, %v831_v35  ;;  %880 = vst.msk [vmem:[#allocation2 + $0xb8] sm:$0xff] %vm278_vm0, %v847_v36  ;;  %v1450_v48 = vpop.f32.mrb[17].mxu0  ;;  %v1498_v50 = vpop.f32.mrb[17].mxu1  ;;  %v338_v39 = vld [vmem:[#allocation2 + $0xd8] sm:$0xff] }
 0x149   : > { %v952_v42 = vadd.f32 %v1990_v15, %v913_v40  ;;  %v967_v45 = vmax.f32 %v935_v37, 0.0  ;;  %v1451_v53 = vadd.f32 %v1450_v48, %v1449_v43  ;;  %v1499_v54 = vadd.f32 %v1498_v50, %v1497_v44  ;;  %v1452_v55 = vpop.f32.mrb[18].mxu0  ;;  %v1500_v56 = vpop.f32.mrb[18].mxu1 }
 0x14a   : > { %v983_v46 = vmax.f32 %v951_v38, 0.0  ;;  %v968_v51 = vmax.f32 %v936_v41, 0.0  ;;  %v1453_v59 = vpop.f32.mrb[19].mxu0  ;;  %v1501_v60 = vpop.f32.mrb[19].mxu1  ;;  %v322_v38 = vld [vmem:[#allocation2 + $0x58] sm:$0xff] }
 0x14b   : > { %v984_v52 = vmax.f32 %v952_v42, 0.0  ;;  %v1381_v57 = vpack.c.bf16 %v967_v45, %v967_v45  ;;  %v832_v63 = vadd.f32 %v1451_v53, %v319_v47  ;;  %v848_v0 = vadd.f32 %v1499_v54, %v335_v49 }
 0x14c   : > { %v1397_v58 = vpack.c.bf16 %v983_v46, %v983_v46  ;;  %v1382_v61 = vpack.c.bf16 %v968_v51, %v968_v51  ;;  %v1454_v3 = vadd.f32 %v1453_v59, %v1452_v55  ;;  %v1502_v4 = vadd.f32 %v1501_v60, %v1500_v56  ;;  %v323_v56 = vld [vmem:[#allocation2 + $0x60] sm:$0xff] }
 0x14d   : > { %v1398_v62 = vpack.c.bf16 %v984_v52, %v984_v52  ;;  %1128 = vst.msk [vmem:[%s2004_s29 + $0x10] sm:$0xf] %vm1123_vm1, %v1381_v57 }
 0x14e   : > { %1144 = vst.msk [vmem:[%s2004_s29 + $0x50] sm:$0xf] %vm1123_vm1, %v1397_v58  ;;  %1129 = vst.msk [vmem:[%s2004_s29 + $0x14] sm:$0xf] %vm1123_vm1, %v1382_v61  ;;  %v898_v5 = vld [vmem:[#allocation2 + $0x30] sm:$0xff]  ;;  %v833_v11 = vadd.f32 %v1454_v3, %v320_v1  ;;  %v849_v12 = vadd.f32 %v1502_v4, %v336_v2  ;;  %v339_v58 = vld [vmem:[#allocation2 + $0xe0] sm:$0xff] }
 0x14f   : > { %1145 = vst.msk [vmem:[%s2004_s29 + $0x54] sm:$0xf] %vm1123_vm1, %v1398_v62  ;;  %v914_v6 = vld [vmem:[#allocation2 + $0xb0] sm:$0xff]  ;;  %v937_v7 = vadd.f32 %v1990_v15, %v898_v5  ;;  %v899_v9 = vld [vmem:[#allocation2 + $0x38] sm:$0xff]  ;;  %v1455_v16 = vpop.f32.mrb[20].mxu0  ;;  %v1503_v17 = vpop.f32.mrb[20].mxu1 }
 0x150   : > { %865 = vst.msk [vmem:[#allocation2 + $0x40] sm:$0xff] %vm278_vm0, %v832_v63  ;;  %881 = vst.msk [vmem:[#allocation2 + $0xc0] sm:$0xff] %vm278_vm0, %v848_v0  ;;  %v953_v8 = vadd.f32 %v1990_v15, %v914_v6  ;;  %v915_v10 = vld [vmem:[#allocation2 + $0xb8] sm:$0xff]  ;;  %v938_v13 = vadd.f32 %v1990_v15, %v899_v9  ;;  %v1456_v21 = vpop.f32.mrb[21].mxu0  ;;  %v1504_v23 = vpop.f32.mrb[21].mxu1  ;;  %v324_v4 = vld [vmem:[#allocation2 + $0x68] sm:$0xff] }
 0x151   : > { %v954_v14 = vadd.f32 %v1990_v15, %v915_v10  ;;  %v969_v18 = vmax.f32 %v937_v7, 0.0  ;;  %866 = vst.msk [vmem:[#allocation2 + $0x48] sm:$0xff] %vm278_vm0, %v833_v11  ;;  %882 = vst.msk [vmem:[#allocation2 + $0xc8] sm:$0xff] %vm278_vm0, %v849_v12  ;;  %v1457_v26 = vadd.f32 %v1456_v21, %v1455_v16  ;;  %v1505_v27 = vadd.f32 %v1504_v23, %v1503_v17  ;;  %v1458_v28 = vpop.f32.mrb[22].mxu0  ;;  %v1506_v29 = vpop.f32.mrb[22].mxu1  ;;  %v340_v6 = vld [vmem:[#allocation2 + $0xe8] sm:$0xff] }
 0x152   : > { %v985_v19 = vmax.f32 %v953_v8, 0.0  ;;  %v970_v24 = vmax.f32 %v938_v13, 0.0  ;;  %v1459_v32 = vpop.f32.mrb[23].mxu0  ;;  %v1507_v33 = vpop.f32.mrb[23].mxu1 }
 0x153   : > { %v986_v25 = vmax.f32 %v954_v14, 0.0  ;;  %v1383_v30 = vpack.c.bf16 %v969_v18, %v969_v18  ;;  %v834_v36 = vadd.f32 %v1457_v26, %v321_v20  ;;  %v850_v37 = vadd.f32 %v1505_v27, %v337_v22 }
 0x154   : > { %v1399_v31 = vpack.c.bf16 %v985_v19, %v985_v19  ;;  %v1384_v34 = vpack.c.bf16 %v970_v24, %v970_v24  ;;  %v1460_v42 = vadd.f32 %v1459_v32, %v1458_v28  ;;  %v1508_v43 = vadd.f32 %v1507_v33, %v1506_v29  ;;  %v325_v29 = vld [vmem:[#allocation2 + $0x70] sm:$0xff] }
 0x155   : > { %v1400_v35 = vpack.c.bf16 %v986_v25, %v986_v25  ;;  %1130 = vst.msk [vmem:[%s2004_s29 + $0x18] sm:$0xf] %vm1123_vm1, %v1383_v30 }
 0x156   : > { %1146 = vst.msk [vmem:[%s2004_s29 + $0x58] sm:$0xf] %vm1123_vm1, %v1399_v31  ;;  %1131 = vst.msk [vmem:[%s2004_s29 + $0x1c] sm:$0xf] %vm1123_vm1, %v1384_v34  ;;  %v835_v46 = vadd.f32 %v1460_v42, %v322_v38  ;;  %v851_v47 = vadd.f32 %v1508_v43, %v338_v39  ;;  %v341_v31 = vld [vmem:[#allocation2 + $0xf0] sm:$0xff]  ;;  %v342_v43 = vld [vmem:[#allocation2 + $0xf8] sm:$0xff] }
 0x157   : > { %v900_v40 = vld [vmem:[#allocation2 + $0x40] sm:$0xff]  ;;  %1147 = vst.msk [vmem:[%s2004_s29 + $0x5c] sm:$0xf] %vm1123_vm1, %v1400_v35  ;;  %v1461_v52 = vpop.f32.mrb[24].mxu0  ;;  %v1509_v53 = vpop.f32.mrb[24].mxu1 }
 0x158   : > { %v916_v41 = vld [vmem:[#allocation2 + $0xc0] sm:$0xff]  ;;  %v939_v44 = vadd.f32 %v1990_v15, %v900_v40  ;;  %867 = vst.msk [vmem:[#allocation2 + $0x50] sm:$0xff] %vm278_vm0, %v834_v36  ;;  %883 = vst.msk [vmem:[#allocation2 + $0xd0] sm:$0xff] %vm278_vm0, %v850_v37  ;;  %v901_v50 = vld [vmem:[#allocation2 + $0x48] sm:$0xff]  ;;  %v1462_v57 = vpop.f32.mrb[25].mxu0  ;;  %v1510_v59 = vpop.f32.mrb[25].mxu1 }
 0x159   : > { %v955_v45 = vadd.f32 %v1990_v15, %v916_v41  ;;  %v917_v51 = vld [vmem:[#allocation2 + $0xc8] sm:$0xff]  ;;  %v940_v54 = vadd.f32 %v1990_v15, %v901_v50  ;;  %868 = vst.msk [vmem:[#allocation2 + $0x58] sm:$0xff] %vm278_vm0, %v835_v46  ;;  %884 = vst.msk [vmem:[#allocation2 + $0xd8] sm:$0xff] %vm278_vm0, %v851_v47  ;;  %v1463_v62 = vadd.f32 %v1462_v57, %v1461_v52  ;;  %v1464_v0 = vpop.f32.mrb[26].mxu0  ;;  %v1512_v1 = vpop.f32.mrb[26].mxu1  ;;  %v326_v41 = vld [vmem:[#allocation2 + $0x78] sm:$0xff] }
 0x15a   : > { %v971_v48 = vmax.f32 %v939_v44, 0.0  ;;  %v956_v55 = vadd.f32 %v1990_v15, %v917_v51  ;;  %v1511_v63 = vadd.f32 %v1510_v59, %v1509_v53  ;;  %v1465_v5 = vpop.f32.mrb[27].mxu0  ;;  %v1513_v7 = vpop.f32.mrb[27].mxu1 }
 0x15b   : > { %v987_v49 = vmax.f32 %v955_v45, 0.0  ;;  %v972_v2 = vmax.f32 %v940_v54, 0.0  ;;  %v836_v8 = vadd.f32 %v1463_v62, %v323_v56  ;;  %v1466_v10 = vadd.f32 %v1465_v5, %v1464_v0 }
 0x15c   : > { %v1385_v60 = vpack.c.bf16 %v971_v48, %v971_v48  ;;  %v988_v3 = vmax.f32 %v956_v55, 0.0  ;;  %v852_v9 = vadd.f32 %v1511_v63, %v339_v58  ;;  %v1514_v11 = vadd.f32 %v1513_v7, %v1512_v1 }
 0x15d   : > { %v1401_v61 = vpack.c.bf16 %v987_v49, %v987_v49  ;;  %v1386_v12 = vpack.c.bf16 %v972_v2, %v972_v2  ;;  %869 = vst.msk [vmem:[#allocation2 + $0x60] sm:$0xff] %vm278_vm0, %v836_v8  ;;  %v837_v19 = vadd.f32 %v1466_v10, %v324_v4 }
 0x15e   : > { %1132 = vst.msk [vmem:[%s2004_s29 + $0x20] sm:$0xf] %vm1123_vm1, %v1385_v60  ;;  %v1402_v13 = vpack.c.bf16 %v988_v3, %v988_v3  ;;  %v853_v20 = vadd.f32 %v1514_v11, %v340_v6 }
 0x15f   : > { %1148 = vst.msk [vmem:[%s2004_s29 + $0x60] sm:$0xf] %vm1123_vm1, %v1401_v61  ;;  %v902_v14 = vld [vmem:[#allocation2 + $0x50] sm:$0xff]  ;;  %1133 = vst.msk [vmem:[%s2004_s29 + $0x24] sm:$0xf] %vm1123_vm1, %v1386_v12  ;;  %v1467_v25 = vpop.f32.mrb[28].mxu0 }
 0x160   : > { %v918_v16 = vld [vmem:[#allocation2 + $0xd0] sm:$0xff]  ;;  %v941_v17 = vadd.f32 %v1990_v15, %v902_v14  ;;  %885 = vst.msk [vmem:[#allocation2 + $0xe0] sm:$0xff] %vm278_vm0, %v852_v9  ;;  %v903_v23 = vld [vmem:[#allocation2 + $0x58] sm:$0xff]  ;;  %870 = vst.msk [vmem:[#allocation2 + $0x68] sm:$0xff] %vm278_vm0, %v837_v19  ;;  %v1515_v26 = vpop.f32.mrb[28].mxu1  ;;  %v1468_v30 = vpop.f32.mrb[29].mxu0 }
 0x161   : > { %v957_v18 = vadd.f32 %v1990_v15, %v918_v16  ;;  %1149 = vst.msk [vmem:[%s2004_s29 + $0x64] sm:$0xf] %vm1123_vm1, %v1402_v13  ;;  %v919_v24 = vld [vmem:[#allocation2 + $0xd8] sm:$0xff]  ;;  %v942_v27 = vadd.f32 %v1990_v15, %v903_v23  ;;  %v1516_v32 = vpop.f32.mrb[29].mxu1  ;;  %v1469_v35 = vadd.f32 %v1468_v30, %v1467_v25  ;;  %v1470_v37 = vpop.f32.mrb[30].mxu0 }
 0x162   : > { %v973_v21 = vmax.f32 %v941_v17, 0.0  ;;  %886 = vst.msk [vmem:[#allocation2 + $0xe8] sm:$0xff] %vm278_vm0, %v853_v20  ;;  %v958_v28 = vadd.f32 %v1990_v15, %v919_v24  ;;  %v1517_v36 = vadd.f32 %v1516_v32, %v1515_v26  ;;  %v1518_v38 = vpop.f32.mrb[30].mxu1  ;;  %v1471_v42 = vpop.f32.mrb[31].mxu0 }
 0x163   : > { %v989_v22 = vmax.f32 %v957_v18, 0.0  ;;  %v974_v39 = vmax.f32 %v942_v27, 0.0  ;;  %v1519_v44 = vpop.f32.mrb[31].mxu1  ;;  %v838_v45 = vadd.f32 %v1469_v35, %v325_v29  ;;  %v1472_v47 = vadd.f32 %v1471_v42, %v1470_v37 }
 0x164   : > { %v1387_v33 = vpack.c.bf16 %v973_v21, %v973_v21  ;;  %v990_v40 = vmax.f32 %v958_v28, 0.0  ;;  %v854_v46 = vadd.f32 %v1517_v36, %v341_v31  ;;  %v1520_v48 = vadd.f32 %v1519_v44, %v1518_v38  ;;  %v904_v51 = vld [vmem:[#allocation2 + $0x60] sm:$0xff] }
 0x165   : > { %v1403_v34 = vpack.c.bf16 %v989_v22, %v989_v22  ;;  %v1388_v49 = vpack.c.bf16 %v974_v39, %v974_v39  ;;  %v943_v53 = vadd.f32 %v1990_v15, %v904_v51  ;;  %871 = vst.msk [vmem:[#allocation2 + $0x70] sm:$0xff] %vm278_vm0, %v838_v45  ;;  %v839_v55 = vadd.f32 %v1472_v47, %v326_v41 }
 0x166   : > { %1134 = vst.msk [vmem:[%s2004_s29 + $0x28] sm:$0xf] %vm1123_vm1, %v1387_v33  ;;  %v1404_v50 = vpack.c.bf16 %v990_v40, %v990_v40  ;;  %v855_v56 = vadd.f32 %v1520_v48, %v342_v43 }
 0x167   : > { %1150 = vst.msk [vmem:[%s2004_s29 + $0x68] sm:$0xf] %vm1123_vm1, %v1403_v34  ;;  %v920_v52 = vld [vmem:[#allocation2 + $0xe0] sm:$0xff]  ;;  %1135 = vst.msk [vmem:[%s2004_s29 + $0x2c] sm:$0xf] %vm1123_vm1, %v1388_v49  ;;  %v905_v57 = vld [vmem:[#allocation2 + $0x68] sm:$0xff] }
 0x168   : > { %v959_v54 = vadd.f32 %v1990_v15, %v920_v52  ;;  %887 = vst.msk [vmem:[#allocation2 + $0xf0] sm:$0xff] %vm278_vm0, %v854_v46  ;;  %v975_v59 = vmax.f32 %v943_v53, 0.0  ;;  %v944_v61 = vadd.f32 %v1990_v15, %v905_v57  ;;  %872 = vst.msk [vmem:[#allocation2 + $0x78] sm:$0xff] %vm278_vm0, %v839_v55 }
 0x169   : > { %1151 = vst.msk [vmem:[%s2004_s29 + $0x6c] sm:$0xf] %vm1123_vm1, %v1404_v50  ;;  %v921_v58 = vld [vmem:[#allocation2 + $0xe8] sm:$0xff] }
 0x16a   : > { %v991_v60 = vmax.f32 %v959_v54, 0.0  ;;  %v960_v62 = vadd.f32 %v1990_v15, %v921_v58  ;;  %888 = vst.msk [vmem:[#allocation2 + $0xf8] sm:$0xff] %vm278_vm0, %v855_v56  ;;  %v1389_v63 = vpack.c.bf16 %v975_v59, %v975_v59  ;;  %v976_v1 = vmax.f32 %v944_v61, 0.0 }
 0x16c   : > { %v1405_v0 = vpack.c.bf16 %v991_v60, %v991_v60  ;;  %v992_v2 = vmax.f32 %v960_v62, 0.0  ;;  %1136 = vst.msk [vmem:[%s2004_s29 + $0x30] sm:$0xf] %vm1123_vm1, %v1389_v63  ;;  %v1390_v3 = vpack.c.bf16 %v976_v1, %v976_v1  ;;  %v906_v5 = vld [vmem:[#allocation2 + $0x70] sm:$0xff] }
 0x16d   : > { %v945_v7 = vadd.f32 %v1990_v15, %v906_v5 }
 0x16e   : > { %1152 = vst.msk [vmem:[%s2004_s29 + $0x70] sm:$0xf] %vm1123_vm1, %v1405_v0  ;;  %v1406_v4 = vpack.c.bf16 %v992_v2, %v992_v2  ;;  %1137 = vst.msk [vmem:[%s2004_s29 + $0x34] sm:$0xf] %vm1123_vm1, %v1390_v3 }
 0x16f   : > { %v922_v6 = vld [vmem:[#allocation2 + $0xf0] sm:$0xff]  ;;  %v907_v9 = vld [vmem:[#allocation2 + $0x78] sm:$0xff]  ;;  %v977_v11 = vmax.f32 %v945_v7, 0.0 }
 0x170   : > { %1153 = vst.msk [vmem:[%s2004_s29 + $0x74] sm:$0xf] %vm1123_vm1, %v1406_v4  ;;  %v961_v8 = vadd.f32 %v1990_v15, %v922_v6  ;;  %v946_v13 = vadd.f32 %v1990_v15, %v907_v9 }
 0x171   : > { %v923_v10 = vld [vmem:[#allocation2 + $0xf8] sm:$0xff]  ;;  %v1391_v16 = vpack.c.bf16 %v977_v11, %v977_v11 }
 0x172   : > { %v993_v12 = vmax.f32 %v961_v8, 0.0  ;;  %v962_v14 = vadd.f32 %v1990_v15, %v923_v10  ;;  %v978_v18 = vmax.f32 %v946_v13, 0.0 }
 0x173   : > { %1138 = vst.msk [vmem:[%s2004_s29 + $0x38] sm:$0xf] %vm1123_vm1, %v1391_v16 }
 0x174   : > { %v1407_v17 = vpack.c.bf16 %v993_v12, %v993_v12  ;;  %v994_v19 = vmax.f32 %v962_v14, 0.0  ;;  %v1392_v20 = vpack.c.bf16 %v978_v18, %v978_v18 }
 0x176   : > { %1154 = vst.msk [vmem:[%s2004_s29 + $0x78] sm:$0xf] %vm1123_vm1, %v1407_v17  ;;  %v1408_v21 = vpack.c.bf16 %v994_v19, %v994_v19  ;;  %1139 = vst.msk [vmem:[%s2004_s29 + $0x3c] sm:$0xf] %vm1123_vm1, %v1392_v20 }
 0x178   : > { %1155 = vst.msk [vmem:[%s2004_s29 + $0x7c] sm:$0xf] %vm1123_vm1, %v1408_v21 }
 0x179 PF: > { %s16_s17 = sadd.s32 1, %s1739_s17   ;;  %s2147_s12 = smov %s1723_s13 }
 0x17a   : > { %p13_p9 = scmp.ge.s32.totalorder %s16_s17, 4   ;;  %s2148_s13 = smov %s1727_s14 }
 0x17b   : > { %s2149_s14 = smov %s1814_s24  ;;  %s2150_s15 = smov %s1735_s16 }
 0x17c   : > { %s2151_s16 = smov %s2153_s19  ;;  %15 = sbr.rel (!%p13_p9) target bundleno = 4 (0x4), region = 86 }
 0x183   :  { %1184 = vsyncpa [#allocation4], 1 }
 0x184   :  { %1186 = vsyncpa [#allocation4 + $0x1], 1 }

</bundles_post_ra>
